<compile_context>
chip_gen: v7x
topology: tpu7x:2x2x1
jax: 0.10.0
libtpu: 0.0.40
codegen_flags: <defaults>
</compile_context>

<pallas_src>
import functools
import math

import jax
import jax.numpy as jnp
from jax.experimental import pallas as pl
from jax.experimental.pallas import tpu as pltpu


_LANES = 128            # vreg lane width
_SUBLANES = 8           # f32 sublane count (scaled per dtype below)
_MIN_BLOCK_ROWS = 512   # never shrink a block below this (per-step overhead)
_MIN_GRID_STEPS = 4     # aim for >= 4 grid steps so both v7x TCs get work
_TARGET_BLOCK_BYTES = 2 << 20   # ~2 MiB/block => <= 8 MiB double-buffered


# ----------------------------------------------------------------------------
# Pallas kernel: residual add (identity blocks/shortcut) + activation, fused.
# ----------------------------------------------------------------------------
def _residual_block_kernel(x_ref, o_ref, *, activation):
    """out = activate(blocks(x) + residual), with blocks = shortcut = Identity.

    x_ref / o_ref : (block_rows, 128) lane-dense tiles of the flattened tensor.
    """
    x = x_ref[...]

    if activation == 'selu':
        # exp() goes to the EUP; keep this branch in f32 (v5e has no bf16 EUP)
        # and use expm1 for accuracy near zero.
        y = x.astype(jnp.float32)
        y = y + y                           # blocks(x) + residual  (both == x)
        alpha = 1.6732632423543772
        scale = 1.0507009873554805
        y = scale * jnp.where(y > 0.0, y, alpha * jnp.expm1(y))
        o_ref[...] = y.astype(o_ref.dtype)
        return

    # relu / leaky_relu / none: compute in the native dtype (bf16 VALU on
    # v6e/v7x; Mosaic widens transparently where needed on v5e).
    y = x + x                               # blocks(x) + residual  (both == x)
    if activation == 'relu':
        y = jnp.maximum(y, 0)
    elif activation == 'leaky_relu':
        y = jnp.where(y >= 0, y, 0.01 * y)
    elif activation == 'none':
        pass
    else:
        raise ValueError(f"unknown activation: {activation!r}")

    o_ref[...] = y.astype(o_ref.dtype)


# ----------------------------------------------------------------------------
# Block-size selection.
# ----------------------------------------------------------------------------
def _choose_block_rows(rows, itemsize, block_rows, sub):
    """Pick a sublane-aligned row-block size for the (rows, 128) slab."""
    if block_rows is None:
        # ~2 MiB per block regardless of dtype (4096 rows f32, 8192 rows bf16).
        block_rows = max(_MIN_BLOCK_ROWS, _TARGET_BLOCK_BYTES // (_LANES * itemsize))

    if rows <= sub:
        return rows                          # single full-extent block

    # Aim for >= _MIN_GRID_STEPS steps (megacore sharding on v7x), but never
    # shrink a block below _MIN_BLOCK_ROWS (fixed per-step overhead floor).
    per_step = pl.cdiv(rows, _MIN_GRID_STEPS)
    br = min(block_rows, rows, max(per_step, _MIN_BLOCK_ROWS))
    br = pl.cdiv(br, sub) * sub              # sublane-aligned block rows
    if br >= rows:
        return rows                          # full extent is always legal
    return br


# ----------------------------------------------------------------------------
# Wrapper: present a lane-dense (rows, 128) slab, tile rows, single call.
# ----------------------------------------------------------------------------
def residual_block_forward(x, *, activation='relu', block_rows=None):
    """Replicates ResidualBlock.forward for any input shape / dtype."""
    orig_shape = x.shape
    orig_dtype = x.dtype

    total = math.prod(int(d) for d in orig_shape) if orig_shape else 1
    itemsize = jnp.dtype(orig_dtype).itemsize
    sub = _SUBLANES * max(1, 4 // itemsize)          # 8 (f32) / 16 (bf16) / 32 (i8)

    flat = x.reshape(-1)
    padded_total = total
    if total % _LANES != 0:
        # Rare fallback: the lane dim must be a multiple of 128 for the
        # lane-dense reshape.  This costs one pad + one slice copy.
        padded_total = pl.cdiv(total, _LANES) * _LANES
        flat = jnp.pad(flat, (0, padded_total - total))

    rows = padded_total // _LANES
    x2 = flat.reshape(rows, _LANES)                  # free bitcast reshape

    br = _choose_block_rows(rows, itemsize, block_rows, sub)
    grid = (pl.cdiv(rows, br),)

    out2 = pl.pallas_call(
        functools.partial(_residual_block_kernel, activation=activation),
        grid=grid,
        in_specs=[pl.BlockSpec((br, _LANES), lambda i: (i, 0))],
        out_specs=pl.BlockSpec((br, _LANES), lambda i: (i, 0)),
        out_shape=jax.ShapeDtypeStruct((rows, _LANES), orig_dtype),
        compiler_params=pltpu.CompilerParams(
            dimension_semantics=("parallel",)),
    )(x2)

    flat_out = out2.reshape(-1)
    if padded_total != total:
        flat_out = flat_out[:total]
    return flat_out.reshape(orig_shape)


# ----------------------------------------------------------------------------
if __name__ == "__main__":
    # Small NCHW input consistent with the module (channels unchanged ->
    # the shortcut branch is the identity path either way).
    N, C, H, W = 2, 4, 16, 16
    key = jax.random.PRNGKey(0)
    x = jax.random.normal(key, (N, C, H, W), jnp.float32)

    fwd = jax.jit(functools.partial(residual_block_forward, activation='relu'))
    y = jax.block_until_ready(fwd(x))

    # Reference: residual = x; x = Identity(x); x += residual; x = relu(x)
    s = x + x
    ref = jnp.maximum(s, 0.0)
    assert y.shape == x.shape
    assert y.dtype == x.dtype
    assert bool(jnp.allclose(y, ref, atol=1e-6))

    # leaky_relu
    y_lrelu = jax.block_until_ready(
        residual_block_forward(x, activation='leaky_relu'))
    ref_lrelu = jnp.where(s >= 0.0, s, 0.01 * s)
    assert bool(jnp.allclose(y_lrelu, ref_lrelu, atol=1e-6))

    # selu (f32 internal path, expm1)
    y_selu = jax.block_until_ready(
        residual_block_forward(x, activation='selu'))
    alpha, scale = 1.6732632423543772, 1.0507009873554805
    ref_selu = scale * jnp.where(s > 0.0, s, alpha * jnp.expm1(s))
    assert bool(jnp.allclose(y_selu, ref_selu, atol=1e-5))

    # none
    y_none = jax.block_until_ready(
        residual_block_forward(x, activation='none'))
    assert bool(jnp.allclose(y_none, s, atol=1e-6))

    # bf16 input exercises native-dtype compute (no f32 round trip).
    xb = x.astype(jnp.bfloat16)
    yb = jax.block_until_ready(residual_block_forward(xb, activation='relu'))
    refb = jnp.maximum(xb + xb, jnp.bfloat16(0))
    assert yb.dtype == jnp.bfloat16
    assert bool(jnp.all(yb == refb))

    # Non-128-aligned element count exercises the pad/slice fallback path.
    xo = jax.random.normal(jax.random.PRNGKey(1), (2, 3, 5, 7), jnp.float32)
    yo = jax.block_until_ready(residual_block_forward(xo, activation='relu'))
    assert bool(jnp.allclose(yo, jnp.maximum(xo + xo, 0.0), atol=1e-6))

    print("KERNEL_OK")
</pallas_src>

<mosaic_0001>
module attributes {stable_mosaic.version = 11 : i64} {
  func.func @_residual_block_kernel(%arg0: i32, %arg1: memref<16x128xf32, #tpu.memory_space<vmem>>, %arg2: memref<16x128xf32, #tpu.memory_space<vmem>>) attributes {dimension_semantics = [#tpu.dimension_semantics<parallel>], iteration_bounds = array<i64: 1>, scalar_prefetch = 0 : i64, scratch_operands = 0 : i64, tpu.core_type = #tpu.core_type<tc>, window_params = [{transform_indices = @transform_0, window_bounds = array<i64: 16, 128>}, {transform_indices = @transform_1, window_bounds = array<i64: 16, 128>}]} {
    %c0 = arith.constant 0 : index
    %c0_0 = arith.constant 0 : index
    %0 = vector.load %arg1[%c0, %c0_0] : memref<16x128xf32, #tpu.memory_space<vmem>>, vector<16x128xf32>
    %1 = arith.addf %0, %0 : vector<16x128xf32>
    %cst = arith.constant 0.000000e+00 : f32
    %2 = vector.broadcast %cst : f32 to vector<16x128xf32>
    %3 = arith.maximumf %1, %2 : vector<16x128xf32>
    %c0_1 = arith.constant 0 : index
    %c0_2 = arith.constant 0 : index
    %4 = vector.load %arg2[%c0_1, %c0_2] : memref<16x128xf32, #tpu.memory_space<vmem>>, vector<16x128xf32>
    tpu.vector_store %arg2[%c0_1, %c0_2], %3 {strides = array<i32>} : memref<16x128xf32, #tpu.memory_space<vmem>>, vector<16x128xf32>,
    return
  }
  func.func @transform_0(%arg0: i32) -> (i32, i32) {
    %c0_i32 = arith.constant 0 : i32
    %c0_i32_0 = arith.constant 0 : i32
    return %arg0, %c0_i32 : i32, i32
  }
  func.func @transform_1(%arg0: i32) -> (i32, i32) {
    %c0_i32 = arith.constant 0 : i32
    %c0_i32_0 = arith.constant 0 : i32
    return %arg0, %c0_i32 : i32, i32
  }
}

</mosaic_0001>

<bundles_post_ra>
// kernel: residual_block_forward.1
= control target key start
LH: loop header
LB: loop body
LE: loop exit
PB: predicated region body
PF: predicated region fallthrough
CT: control target
= control target key end

     0   :  { %s42_s0 = inlined_call_operand.vmem [shape: f32[16,128], index: 0, kind: input, shape index: {}]   ;;  %s43_s1 = inlined_call_operand.vmem [shape: f32[16,128], index: 1, kind: output, shape index: {}]  }
   0x1   :  { %v8_v0 = vld [vmem:[%s42_s0] sm:$0xff]  ;;  %v9_v1 = vld [vmem:[%s42_s0 + $0x8] sm:$0xff] }
   0x2   :  { %v10_v2 = vadd.f32 %v8_v0, %v8_v0  ;;  %v11_v3 = vadd.f32 %v9_v1, %v9_v1 }
   0x4   :  { %v12_v4 = vmax.f32 %v10_v2, 0.0  ;;  %v13_v5 = vmax.f32 %v11_v3, 0.0 }
   0x6   :  { %14 = vst [vmem:[%s43_s1] sm:$0xff] %v12_v4  ;;  %15 = vst [vmem:[%s43_s1 + $0x8] sm:$0xff] %v13_v5 }

</bundles_post_ra>
